<compile_context>
chip_gen: v5e
topology: v5e:2x2
jax: 0.10.0
libtpu: 0.0.40
codegen_flags: <defaults>
</compile_context>

<pallas_src>
import functools

import jax
import jax.numpy as jnp
from jax.experimental import pallas as pl
from jax.experimental.pallas import tpu as pltpu

_LANE = 128
_HAS_BUFFERED = hasattr(pl, "Buffered")   # import-time capability check


def _round_up(n, m):
    return ((n + m - 1) // m) * m


def _device_kind():
    try:
        return jax.devices()[0].device_kind.lower()
    except Exception:
        return ""


def _vmem_capacity_bytes():
    try:
        return int(pltpu.get_tpu_info().vmem_capacity_bytes)
    except Exception:
        # Conservative fallbacks: 64 MiB/TC on v7x, 128 MiB elsewhere.
        return (64 << 20) if "v7" in _device_kind() else (128 << 20)


def _num_tensorcores():
    # v7x has 2 TensorCores/chip sharing the 'parallel' grid axis; v5e/v6e 1.
    return 2 if "v7" in _device_kind() else 1


def _choose_tile_b(batch, min_rows, num_cores):
    if batch <= min_rows:
        return min_rows
    # >= 2 grid steps per TensorCore so every core gets x/out DMA overlap.
    target_steps = 2 * num_cores
    tile = _round_up(pl.cdiv(batch, target_steps), min_rows)
    # Single-TC chips (128 MiB VMEM) amortize per-step overhead with bigger
    # tiles; v7x (2 TCs, 64 MiB VMEM) keeps tiles <= 256 rows.
    max_tile = 256 if num_cores > 1 else 512
    return max(min_rows, min(max_tile, tile))


def _pad2(a, rows, cols):
    pr, pc = rows - a.shape[0], cols - a.shape[1]
    if pr == 0 and pc == 0:
        return a
    return jnp.pad(a, ((0, pr), (0, pc)))


def _mlp_kernel(x_ref, w1_ref, b1_ref, w2_ref, b2_ref, w3_ref, b3_ref, o_ref,
                h1_ref, h2_ref, *, compute_dtype):
    # x: (TB, E)  w1: (E, H) b1: (1, H)  w2: (H, H) b2: (1, H)
    # w3: (H, O) b3: (1, O)  o: (TB, O)
    # h1/h2: (TB, H) explicit VMEM scratch in the epilogue dtype.
    epi = h1_ref.dtype
    x = x_ref[...].astype(compute_dtype)

    # proj + ReLU: MXU in compute_dtype, f32 accumulate, epilogue in epi dtype
    # (bf16 on v6e/v7x halves spill bytes; f32 on v5e which lacks bf16 VPU).
    h1 = jnp.dot(x, w1_ref[...], preferred_element_type=jnp.float32)
    h1_ref[...] = jnp.maximum(h1.astype(epi) + b1_ref[...], 0.0).astype(epi)

    # ffwd[0] Linear + ffwd[1] ReLU
    h2 = jnp.dot(h1_ref[...].astype(compute_dtype), w2_ref[...],
                 preferred_element_type=jnp.float32)
    h2_ref[...] = jnp.maximum(h2.astype(epi) + b2_ref[...], 0.0).astype(epi)

    # ffwd[2] Dropout: identity in eval mode.
    # TODO(synk): training-mode dropout would use pltpu.prng_seed + prng_random_bits.

    # ffwd[3] Linear (final bias add kept in f32)
    out = jnp.dot(h2_ref[...].astype(compute_dtype), w3_ref[...],
                  preferred_element_type=jnp.float32)
    o_ref[...] = (out + b3_ref[...]).astype(o_ref.dtype)


@functools.partial(
    jax.jit,
    static_argnames=("tile_b", "compute_dtype", "epilogue_dtype",
                     "vmem_limit", "num_cores"))
def _mlp_pallas(x, w1, b1, w2, b2, w3, b3, *, tile_b, compute_dtype,
                epilogue_dtype, vmem_limit, num_cores):
    B, E = x.shape
    H = w1.shape[1]
    O = w3.shape[1]
    grid = (B // tile_b,)

    c_bytes = jnp.dtype(compute_dtype).itemsize
    e_bytes = jnp.dtype(epilogue_dtype).itemsize
    flops = 2 * B * (E * H + H * H + H * O)
    # Weights are re-fetched once per TensorCore when the grid is core-sharded.
    weight_hbm = (E * H + H * H + H * O) * c_bytes + 2 * H * e_bytes + O * 4
    bytes_accessed = int(B * E * x.dtype.itemsize + B * O * x.dtype.itemsize
                         + num_cores * weight_hbm)

    # Weights/biases never change block across the grid -> single-buffer them.
    w_pm = pl.Buffered(1) if _HAS_BUFFERED else None

    return pl.pallas_call(
        functools.partial(_mlp_kernel, compute_dtype=compute_dtype),
        out_shape=jax.ShapeDtypeStruct((B, O), x.dtype),
        grid_spec=pltpu.PrefetchScalarGridSpec(
            num_scalar_prefetch=0,
            grid=grid,
            in_specs=[
                pl.BlockSpec((tile_b, E), lambda i: (i, 0)),                   # x tile
                pl.BlockSpec((E, H), lambda i: (0, 0), pipeline_mode=w_pm),    # w1
                pl.BlockSpec((1, H), lambda i: (0, 0), pipeline_mode=w_pm),    # b1
                pl.BlockSpec((H, H), lambda i: (0, 0), pipeline_mode=w_pm),    # w2
                pl.BlockSpec((1, H), lambda i: (0, 0), pipeline_mode=w_pm),    # b2
                pl.BlockSpec((H, O), lambda i: (0, 0), pipeline_mode=w_pm),    # w3
                pl.BlockSpec((1, O), lambda i: (0, 0), pipeline_mode=w_pm),    # b3
            ],
            out_specs=pl.BlockSpec((tile_b, O), lambda i: (i, 0)),
            scratch_shapes=[
                pltpu.VMEM((tile_b, H), epilogue_dtype),   # h1 (post-ReLU)
                pltpu.VMEM((tile_b, H), epilogue_dtype),   # h2 (post-ReLU)
            ],
        ),
        compiler_params=pltpu.CompilerParams(
            dimension_semantics=("parallel",),
            vmem_limit_bytes=vmem_limit,
        ),
        cost_estimate=pl.CostEstimate(
            flops=flops, transcendentals=0, bytes_accessed=bytes_accessed),
    )(x, w1, b1, w2, b2, w3, b3)


def mlp_forward(x, w1, b1, w2, b2, w3, b3, *, tile_b=None,
                compute_dtype=jnp.bfloat16):
    """Fused MLP forward. x: (B, E). Returns (B, O) in x.dtype."""
    B, E = x.shape
    H = w1.shape[1]
    O = w3.shape[1]

    kind = _device_kind()
    num_cores = _num_tensorcores()
    vmem_cap = _vmem_capacity_bytes()

    compute_dtype = jnp.dtype(compute_dtype).type
    # v5e's VPU has no bf16 ALUs -> keep bias/ReLU epilogue in f32 there;
    # v6e/v7x use a bf16 epilogue (halves (tile_b, H) intermediate bytes).
    if compute_dtype == jnp.bfloat16 and "v5" not in kind:
        epilogue_dtype = jnp.bfloat16
    else:
        epilogue_dtype = jnp.float32

    # bf16 packs 16 sublanes per vreg -> >=16-row tiles for bf16 compute.
    min_rows = 16 if compute_dtype == jnp.bfloat16 else 8

    # Lane-dense padding: feature dims to multiples of 128 so stores are
    # unmasked and MXU tiles fully occupied. Zero padding is exact for this
    # network (padded bias cols are 0, ReLU(0)=0, zero rows contribute nothing).
    E_p, H_p, O_p = (_round_up(d, _LANE) for d in (E, H, O))
    if tile_b is None:
        tile_b = _choose_tile_b(B, min_rows, num_cores)
    B_p = _round_up(B, tile_b)

    # VMEM budget (resident weights/biases, double-buffered x/out tiles,
    # h1/h2 scratch, one live f32 dot result) clamped to 0.9x physical VMEM.
    c_bytes = jnp.dtype(compute_dtype).itemsize
    e_bytes = jnp.dtype(epilogue_dtype).itemsize
    x_bytes = jnp.dtype(x.dtype).itemsize
    w_bufs = 1 if _HAS_BUFFERED else 2
    weight_vmem = ((E_p * H_p + H_p * H_p + H_p * O_p) * c_bytes
                   + 2 * H_p * e_bytes + O_p * 4) * w_bufs
    io_vmem = 2 * tile_b * (E_p * x_bytes + O_p * x_bytes)
    scratch_vmem = 2 * tile_b * H_p * e_bytes
    live_f32 = tile_b * H_p * 4
    resident = weight_vmem + io_vmem + scratch_vmem + live_f32

    vmem_ceiling = int(0.9 * vmem_cap)
    if resident > vmem_ceiling:
        # TODO(synk): add a weight-streaming path (pltpu.emit_pipeline over
        # column panels of w2/w3) once resident weights outgrow this chip's VMEM.
        raise ValueError(
            f"Resident-weight MLP kernel needs ~{resident >> 20} MiB VMEM but "
            f"only {vmem_ceiling >> 20} MiB is available on this chip "
            f"({kind or 'unknown'}).")
    vmem_limit = int(min(max(1.4 * resident + (8 << 20), 16 << 20), vmem_ceiling))

    x_p = _pad2(x, B_p, E_p)
    w1_p = _pad2(w1, E_p, H_p).astype(compute_dtype)
    w2_p = _pad2(w2, H_p, H_p).astype(compute_dtype)
    w3_p = _pad2(w3, H_p, O_p).astype(compute_dtype)
    b1_p = _pad2(b1, 1, H_p).astype(epilogue_dtype)
    b2_p = _pad2(b2, 1, H_p).astype(epilogue_dtype)
    b3_p = _pad2(b3, 1, O_p).astype(jnp.float32)

    out_p = _mlp_pallas(x_p, w1_p, b1_p, w2_p, b2_p, w3_p, b3_p,
                        tile_b=tile_b, compute_dtype=compute_dtype,
                        epilogue_dtype=epilogue_dtype,
                        vmem_limit=vmem_limit, num_cores=num_cores)
    return out_p[:B, :O]


def init_mlp_params(key, emb_dim, hidden_dim, output_dim, dtype=jnp.float32):
    """Deterministic init mimicking nn.Linear's U(-1/sqrt(fan_in), 1/sqrt(fan_in))."""
    ks = jax.random.split(key, 6)

    def linear(kw, kb, fan_in, fan_out):
        bound = 1.0 / jnp.sqrt(fan_in)
        w = jax.random.uniform(kw, (fan_in, fan_out), dtype, -bound, bound)
        b = jax.random.uniform(kb, (1, fan_out), dtype, -bound, bound)
        return w, b

    w1, b1 = linear(ks[0], ks[1], emb_dim, hidden_dim)
    w2, b2 = linear(ks[2], ks[3], hidden_dim, hidden_dim)
    w3, b3 = linear(ks[4], ks[5], hidden_dim, output_dim)
    return w1, b1, w2, b2, w3, b3


def mlp_reference(x, w1, b1, w2, b2, w3, b3):
    h1 = jnp.maximum(x @ w1 + b1, 0.0)
    h2 = jnp.maximum(h1 @ w2 + b2, 0.0)
    return h2 @ w3 + b3


if __name__ == "__main__":
    # Test 1: tiny shapes consistent with the module (exercise padding path).
    key = jax.random.PRNGKey(0)
    k_params, k_x = jax.random.split(key)
    batch, emb_dim, hidden_dim, output_dim = 8, 32, 32, 16
    params = init_mlp_params(k_params, emb_dim, hidden_dim, output_dim)
    x = jax.random.normal(k_x, (batch, emb_dim), jnp.float32)

    out = jax.block_until_ready(mlp_forward(x, *params))
    ref = mlp_reference(x, *params)
    assert out.shape == (batch, output_dim)
    # bf16 MXU inputs/epilogue with f32 accumulation -> loose tolerance vs f32 ref.
    assert jnp.allclose(out, ref, atol=5e-2, rtol=5e-2)

    # Test 2: lane-dense dims, multi-step grid (pipelined x/out, resident weights).
    k2p, k2x = jax.random.split(jax.random.PRNGKey(1))
    batch2, emb2, hid2, out_dim2 = 32, 128, 256, 128
    params2 = init_mlp_params(k2p, emb2, hid2, out_dim2)
    x2 = jax.random.normal(k2x, (batch2, emb2), jnp.float32)

    out2 = jax.block_until_ready(mlp_forward(x2, *params2))
    ref2 = mlp_reference(x2, *params2)
    assert out2.shape == (batch2, out_dim2)
    assert jnp.allclose(out2, ref2, atol=5e-2, rtol=5e-2)

    print("KERNEL_OK")
</pallas_src>

<mosaic_0001>
module attributes {stable_mosaic.version = 11 : i64} {
  func.func @_mlp_kernel(%arg0: i32, %arg1: memref<16x128xf32, #tpu.memory_space<vmem>>, %arg2: memref<128x128xbf16, #tpu.memory_space<vmem>>, %arg3: memref<1x128xbf16, #tpu.memory_space<vmem>>, %arg4: memref<128x128xbf16, #tpu.memory_space<vmem>>, %arg5: memref<1x128xbf16, #tpu.memory_space<vmem>>, %arg6: memref<128x128xbf16, #tpu.memory_space<vmem>>, %arg7: memref<1x128xf32, #tpu.memory_space<vmem>>, %arg8: memref<16x128xf32, #tpu.memory_space<vmem>>, %arg9: memref<16x128xbf16, #tpu.memory_space<vmem>>, %arg10: memref<16x128xbf16, #tpu.memory_space<vmem>>) attributes {dimension_semantics = [#tpu.dimension_semantics<parallel>], iteration_bounds = array<i64: 1>, scalar_prefetch = 0 : i64, scratch_operands = 2 : i64, tpu.core_type = #tpu.core_type<tc>, window_params = [{transform_indices = @transform_0, window_bounds = array<i64: 16, 128>}, {pipeline_mode = #tpu.pipeline_mode<synchronous>, transform_indices = @transform_1, window_bounds = array<i64: 128, 128>}, {pipeline_mode = #tpu.pipeline_mode<synchronous>, transform_indices = @transform_2, window_bounds = array<i64: 1, 128>}, {pipeline_mode = #tpu.pipeline_mode<synchronous>, transform_indices = @transform_3, window_bounds = array<i64: 128, 128>}, {pipeline_mode = #tpu.pipeline_mode<synchronous>, transform_indices = @transform_4, window_bounds = array<i64: 1, 128>}, {pipeline_mode = #tpu.pipeline_mode<synchronous>, transform_indices = @transform_5, window_bounds = array<i64: 128, 128>}, {pipeline_mode = #tpu.pipeline_mode<synchronous>, transform_indices = @transform_6, window_bounds = array<i64: 1, 128>}, {transform_indices = @transform_7, window_bounds = array<i64: 16, 128>}]} {
    %c0 = arith.constant 0 : index
    %c0_0 = arith.constant 0 : index
    %0 = vector.load %arg1[%c0, %c0_0] : memref<16x128xf32, #tpu.memory_space<vmem>>, vector<16x128xf32>
    %1 = arith.truncf %0 : vector<16x128xf32> to vector<16x128xbf16>
    %c0_1 = arith.constant 0 : index
    %c0_2 = arith.constant 0 : index
    %2 = vector.load %arg2[%c0_1, %c0_2] : memref<128x128xbf16, #tpu.memory_space<vmem>>, vector<128x128xbf16>
    %cst = arith.constant dense<0.000000e+00> : vector<16x128xf32>
    %3 = tpu.matmul %1, %2, %cst {dimension_numbers = #tpu.dot_dimension_numbers<[1], [0], [0], [1], [0, 0, 1, 1], [], []>} : vector<16x128xbf16>, vector<128x128xbf16>, vector<16x128xf32> -> vector<16x128xf32>
    %4 = arith.truncf %3 : vector<16x128xf32> to vector<16x128xbf16>
    %c0_3 = arith.constant 0 : index
    %c0_4 = arith.constant 0 : index
    %5 = vector.load %arg3[%c0_3, %c0_4] : memref<1x128xbf16, #tpu.memory_space<vmem>>, vector<1x128xbf16>
    %6 = vector.broadcast %5 : vector<1x128xbf16> to vector<16x128xbf16>
    %7 = arith.addf %4, %6 : vector<16x128xbf16>
    %cst_5 = arith.constant 0.000000e+00 : bf16
    %8 = vector.broadcast %cst_5 : bf16 to vector<16x128xbf16>
    %9 = arith.maximumf %7, %8 : vector<16x128xbf16>
    %c0_6 = arith.constant 0 : index
    %c0_7 = arith.constant 0 : index
    %10 = vector.load %arg9[%c0_6, %c0_7] : memref<16x128xbf16, #tpu.memory_space<vmem>>, vector<16x128xbf16>
    tpu.vector_store %arg9[%c0_6, %c0_7], %9 {strides = array<i32>} : memref<16x128xbf16, #tpu.memory_space<vmem>>, vector<16x128xbf16>,
    %c0_8 = arith.constant 0 : index
    %c0_9 = arith.constant 0 : index
    %11 = vector.load %arg9[%c0_8, %c0_9] : memref<16x128xbf16, #tpu.memory_space<vmem>>, vector<16x128xbf16>
    %c0_10 = arith.constant 0 : index
    %c0_11 = arith.constant 0 : index
    %12 = vector.load %arg4[%c0_10, %c0_11] : memref<128x128xbf16, #tpu.memory_space<vmem>>, vector<128x128xbf16>
    %cst_12 = arith.constant dense<0.000000e+00> : vector<16x128xf32>
    %13 = tpu.matmul %11, %12, %cst_12 {dimension_numbers = #tpu.dot_dimension_numbers<[1], [0], [0], [1], [0, 0, 1, 1], [], []>} : vector<16x128xbf16>, vector<128x128xbf16>, vector<16x128xf32> -> vector<16x128xf32>
    %14 = arith.truncf %13 : vector<16x128xf32> to vector<16x128xbf16>
    %c0_13 = arith.constant 0 : index
    %c0_14 = arith.constant 0 : index
    %15 = vector.load %arg5[%c0_13, %c0_14] : memref<1x128xbf16, #tpu.memory_space<vmem>>, vector<1x128xbf16>
    %16 = vector.broadcast %15 : vector<1x128xbf16> to vector<16x128xbf16>
    %17 = arith.addf %14, %16 : vector<16x128xbf16>
    %cst_15 = arith.constant 0.000000e+00 : bf16
    %18 = vector.broadcast %cst_15 : bf16 to vector<16x128xbf16>
    %19 = arith.maximumf %17, %18 : vector<16x128xbf16>
    %c0_16 = arith.constant 0 : index
    %c0_17 = arith.constant 0 : index
    %20 = vector.load %arg10[%c0_16, %c0_17] : memref<16x128xbf16, #tpu.memory_space<vmem>>, vector<16x128xbf16>
    tpu.vector_store %arg10[%c0_16, %c0_17], %19 {strides = array<i32>} : memref<16x128xbf16, #tpu.memory_space<vmem>>, vector<16x128xbf16>,
    %c0_18 = arith.constant 0 : index
    %c0_19 = arith.constant 0 : index
    %21 = vector.load %arg10[%c0_18, %c0_19] : memref<16x128xbf16, #tpu.memory_space<vmem>>, vector<16x128xbf16>
    %c0_20 = arith.constant 0 : index
    %c0_21 = arith.constant 0 : index
    %22 = vector.load %arg6[%c0_20, %c0_21] : memref<128x128xbf16, #tpu.memory_space<vmem>>, vector<128x128xbf16>
    %cst_22 = arith.constant dense<0.000000e+00> : vector<16x128xf32>
    %23 = tpu.matmul %21, %22, %cst_22 {dimension_numbers = #tpu.dot_dimension_numbers<[1], [0], [0], [1], [0, 0, 1, 1], [], []>} : vector<16x128xbf16>, vector<128x128xbf16>, vector<16x128xf32> -> vector<16x128xf32>
    %c0_23 = arith.constant 0 : index
    %c0_24 = arith.constant 0 : index
    %24 = vector.load %arg7[%c0_23, %c0_24] : memref<1x128xf32, #tpu.memory_space<vmem>>, vector<1x128xf32>
    %25 = vector.broadcast %24 : vector<1x128xf32> to vector<16x128xf32>
    %26 = arith.addf %23, %25 : vector<16x128xf32>
    %c0_25 = arith.constant 0 : index
    %c0_26 = arith.constant 0 : index
    %27 = vector.load %arg8[%c0_25, %c0_26] : memref<16x128xf32, #tpu.memory_space<vmem>>, vector<16x128xf32>
    tpu.vector_store %arg8[%c0_25, %c0_26], %26 {strides = array<i32>} : memref<16x128xf32, #tpu.memory_space<vmem>>, vector<16x128xf32>,
    return
  }
  func.func @transform_0(%arg0: i32) -> (i32, i32) {
    %c0_i32 = arith.constant 0 : i32
    %c0_i32_0 = arith.constant 0 : i32
    return %arg0, %c0_i32 : i32, i32
  }
  func.func @transform_1(%arg0: i32) -> (i32, i32) {
    %c0_i32 = arith.constant 0 : i32
    %c0_i32_0 = arith.constant 0 : i32
    %c0_i32_1 = arith.constant 0 : i32
    return %c0_i32, %c0_i32_0 : i32, i32
  }
  func.func @transform_2(%arg0: i32) -> (i32, i32) {
    %c0_i32 = arith.constant 0 : i32
    %c0_i32_0 = arith.constant 0 : i32
    %c0_i32_1 = arith.constant 0 : i32
    return %c0_i32, %c0_i32_0 : i32, i32
  }
  func.func @transform_3(%arg0: i32) -> (i32, i32) {
    %c0_i32 = arith.constant 0 : i32
    %c0_i32_0 = arith.constant 0 : i32
    %c0_i32_1 = arith.constant 0 : i32
    return %c0_i32, %c0_i32_0 : i32, i32
  }
  func.func @transform_4(%arg0: i32) -> (i32, i32) {
    %c0_i32 = arith.constant 0 : i32
    %c0_i32_0 = arith.constant 0 : i32
    %c0_i32_1 = arith.constant 0 : i32
    return %c0_i32, %c0_i32_0 : i32, i32
  }
  func.func @transform_5(%arg0: i32) -> (i32, i32) {
    %c0_i32 = arith.constant 0 : i32
    %c0_i32_0 = arith.constant 0 : i32
    %c0_i32_1 = arith.constant 0 : i32
    return %c0_i32, %c0_i32_0 : i32, i32
  }
  func.func @transform_6(%arg0: i32) -> (i32, i32) {
    %c0_i32 = arith.constant 0 : i32
    %c0_i32_0 = arith.constant 0 : i32
    %c0_i32_1 = arith.constant 0 : i32
    return %c0_i32, %c0_i32_0 : i32, i32
  }
  func.func @transform_7(%arg0: i32) -> (i32, i32) {
    %c0_i32 = arith.constant 0 : i32
    %c0_i32_0 = arith.constant 0 : i32
    return %arg0, %c0_i32 : i32, i32
  }
}

</mosaic_0001>

<bundles_post_ra>
// kernel: _mlp_pallas.1
= control target key start
LH: loop header
LB: loop body
LE: loop exit
PB: predicated region body
PF: predicated region fallthrough
CT: control target
= control target key end

     0   :  { %12 = vsyncpa [#allocation5], 0  ;;  %s771_s0 = inlined_call_operand.hbm [shape: f32[16,128], index: 0, kind: input, shape index: {}]   ;;  %s772_s1 = inlined_call_operand.hbm [shape: bf16[128,128], index: 1, kind: input, shape index: {}]   ;;  %s773_s2 = inlined_call_operand.vmem [shape: bf16[1,128], index: 2, kind: input, shape index: {}]   ;;  %s774_s3 = inlined_call_operand.hbm [shape: bf16[128,128], index: 3, kind: input, shape index: {}]   ;;  %s775_s4 = inlined_call_operand.vmem [shape: bf16[1,128], index: 4, kind: input, shape index: {}]   ;;  %s776_s5 = inlined_call_operand.hbm [shape: bf16[128,128], index: 5, kind: input, shape index: {}]   ;;  %s777_s6 = inlined_call_operand.vmem [shape: f32[1,128], index: 6, kind: input, shape index: {}]   ;;  %s778_s7 = inlined_call_operand.hbm [shape: f32[16,128], index: 7, kind: output, shape index: {}]  }
   0x1   :  { %13 = vsyncpa [#allocation8], 0 }
   0x2   :  { %14 = vsyncpa [#allocation11], 0  ;;  %s33_s26 = sshll.u32 %s772_s1, 4  ;;  %s34_s26 = int_to_ptr.hbm [resolvable:$true] %s33_s26 }
   0x3   :  { %15 = vsyncpa [#allocation6], 0  ;;  %s692_s27 = smov [#allocation7]   ;;  %s20_s8 = sshll.u32 %s771_s0, 4  ;;  %s21_s8 = int_to_ptr.hbm [resolvable:$true] %s20_s8 }
   0x4   :  { %s35_s28 = sshll.u32 %s692_s27, 4  ;;  %s693_s9 = smov 64   ;;  %s36_s28 = int_to_ptr.vmem [resolvable:$true] %s35_s28 }
   0x5   :  { %s694_s10 = smov 4   ;;  %s695_s11 = smov [#allocation4]  }
   0x6   :  { %41 = dma.hbm_to_vmem [thread:$0]  %s34_s26, 1024, %s36_s28, [#allocation8], %s693_s9, %s693_s9, %s694_s10  }
   0x7   :  { %s22_s12 = sshll.u32 %s695_s11, 4  ;;  %s696_s13 = smov 128   ;;  %s23_s12 = int_to_ptr.vmem [resolvable:$true] %s22_s12 }
   0x8   :  { %s697_s14 = smov 8   ;;  %s48_s16 = sshll.u32 %s774_s3, 4  ;;  %s49_s16 = int_to_ptr.hbm [resolvable:$true] %s48_s16 }
   0x9   :  { %28 = dma.hbm_to_vmem [thread:$0]  %s21_s8, 256, %s23_s12, [#allocation5], %s696_s13, %s696_s13, %s697_s14  }
   0xa   :  { %s698_s17 = smov [#allocation9]   ;;  %s63_s20 = sshll.u32 %s776_s5, 4  ;;  %s64_s20 = int_to_ptr.hbm [resolvable:$true] %s63_s20 }
   0xb   :  { %s50_s0 = sshll.u32 %s698_s17, 4  ;;  %s699_s21 = smov [#allocation10]   ;;  %s51_s0 = int_to_ptr.vmem [resolvable:$true] %s50_s0 }
   0xc   :  { %56 = dma.hbm_to_vmem [thread:$0]  %s49_s16, 1024, %s51_s0, [#allocation8], %s693_s9, %s693_s9, %s694_s10  }
   0xd   :  { %s65_s22 = sshll.u32 %s699_s21, 4  ;;  %s66_s22 = int_to_ptr.vmem [resolvable:$true] %s65_s22 }
   0xe   :  { %71 = dma.hbm_to_vmem [thread:$0]  %s64_s20, 1024, %s66_s22, [#allocation11], %s693_s9, %s693_s9, %s694_s10  }
   0xf   :  { %684 = dma.done.wait [#allocation5], 256  }
  0x10   :  { %685 = vsyncadd [#allocation5], 4294967040 }
  0x11   :  { %686 = dma.done.wait [#allocation8], 2048  }
  0x12   :  { %687 = vsyncadd [#allocation8], 4294965248 }
  0x13   :  { %688 = dma.done.wait [#allocation11], 1024  }
  0x14   :  { %689 = vsyncadd [#allocation11], 4294966272  ;;  %v525_v0 = vld [vmem:[#allocation7 + $0x38] sm:$0xff]  ;;  %v524_v1 = vld [vmem:[#allocation7 + $0x30] sm:$0xff]  ;;  %s399_s29 = sshll.u32 %s778_s7, 4  ;;  %s400_s29 = int_to_ptr.hbm [resolvable:$true] %s399_s29 }
  0x15   :  { %157 = vmatpush.bf16.msra.mxu0 %v525_v0  ;;  %v534_v2 = vld [vmem:[#allocation9 + $0x38] sm:$0xff]  ;;  %v523_v3 = vld [vmem:[#allocation7 + $0x28] sm:$0xff]  ;;  %v522_v4 = vld [vmem:[#allocation7 + $0x20] sm:$0xff] }
  0x16   :  { %265 = vmatpush.bf16.msra.mxu1 %v534_v2  ;;  %v521_v5 = vld [vmem:[#allocation7 + $0x18] sm:$0xff]  ;;  %v520_v6 = vld [vmem:[#allocation7 + $0x10] sm:$0xff]  ;;  %v519_v7 = vld [vmem:[#allocation7 + $0x8] sm:$0xff] }
  0x17   :  { %v518_v8 = vld [vmem:[#allocation7] sm:$0xff]  ;;  %v90_v9 = vld [vmem:[#allocation4] sm:$0xff]  ;;  %v91_v10 = vld [vmem:[#allocation4 + $0x8] sm:$0xff] }
  0x18   :  { %v92_v11 = vpack.c.bf16 %v91_v10, %v90_v9  ;;  %v533_v12 = vld [vmem:[#allocation9 + $0x30] sm:$0xff]  ;;  %v532_v13 = vld [vmem:[#allocation9 + $0x28] sm:$0xff]  ;;  %v531_v14 = vld [vmem:[#allocation9 + $0x20] sm:$0xff] }
  0x19   :  { %158 = vmatpush.bf16.msra.mxu0 %v524_v1  ;;  %v530_v15 = vld [vmem:[#allocation9 + $0x18] sm:$0xff]  ;;  %v529_v16 = vld [vmem:[#allocation9 + $0x10] sm:$0xff]  ;;  %v528_v17 = vld [vmem:[#allocation9 + $0x8] sm:$0xff] }
  0x1a   :  { %266 = vmatpush.bf16.msra.mxu1 %v533_v12  ;;  %v527_v18 = vld [vmem:[#allocation9] sm:$0xff]  ;;  %v543_v20 = vld [vmem:[#allocation10 + $0x38] sm:$0xff]  ;;  %v542_v36 = vld [vmem:[#allocation10 + $0x30] sm:$0xff] }
  0x1b   :  { %v173_v19 = vld [vmem:[%s773_s2] sm:$0x1]  ;;  %377 = vmatpush.bf16.msra.mxu2 %v543_v20  ;;  %v541_v37 = vld [vmem:[#allocation10 + $0x28] sm:$0xff]  ;;  %v539_v39 = vld [vmem:[#allocation10 + $0x18] sm:$0xff] }
  0x1c   :  { %v175_v21 = vpack.i.b16 %v173_v19, %v173_v19  ;;  %v540_v38 = vld [vmem:[#allocation10 + $0x20] sm:$0xff]  ;;  %v538_v40 = vld [vmem:[#allocation10 + $0x10] sm:$0xff]  ;;  %v537_v41 = vld [vmem:[#allocation10 + $0x8] sm:$0xff] }
  0x1d   :  { %159 = vmatpush.bf16.msra.mxu0 %v523_v3  ;;  %v536_v42 = vld [vmem:[#allocation10] sm:$0xff] }
  0x1e   :  { %267 = vmatpush.bf16.msra.mxu1 %v532_v13  ;;  %v177_v24 = vperm.slane %v175_v21, 0  ;;  %v281_v43 = vld [vmem:[%s775_s4] sm:$0x1]  ;;  %s700_s4 = smov [#allocation12]  }
  0x1f   :  { %378 = vmatpush.bf16.msra.mxu2 %v542_v36  ;;  %v283_v44 = vpack.i.b16 %v281_v43, %v281_v43  ;;  %v563_v59 = vld [vmem:[%s777_s6] ss:$0 sm:$0xff]  ;;  %s397_s26 = sshll.u32 %s700_s4, 4  ;;  %s398_s26 = int_to_ptr.vmem [resolvable:$true] %s397_s26 }
  0x20   :  { %v180_v26 = vunpack.c.l.bf16 %v177_v24 }
  0x21   :  { %160 = vmatpush.bf16.msra.mxu0 %v522_v4  ;;  %v285_v47 = vperm.slane %v283_v44, 0 }
  0x22   :  { %268 = vmatpush.bf16.msra.mxu1 %v531_v14 }
  0x23   :  { %379 = vmatpush.bf16.msra.mxu2 %v541_v37  ;;  %v288_v49 = vunpack.c.l.bf16 %v285_v47 }
  0x25   :  { %161 = vmatpush.bf16.msra.mxu0 %v521_v5 }
  0x26   :  { %269 = vmatpush.bf16.msra.mxu1 %v530_v15 }
  0x27   :  { %380 = vmatpush.bf16.msra.mxu2 %v540_v38 }
  0x29   :  { %162 = vmatpush.bf16.msra.mxu0 %v520_v6 }
  0x2a   :  { %270 = vmatpush.bf16.msra.mxu1 %v529_v16 }
  0x2b   :  { %381 = vmatpush.bf16.msra.mxu2 %v539_v39 }
  0x2d   :  { %163 = vmatpush.bf16.msra.mxu0 %v519_v7 }
  0x2e   :  { %271 = vmatpush.bf16.msra.mxu1 %v528_v17 }
  0x2f   :  { %382 = vmatpush.bf16.msra.mxu2 %v538_v40 }
  0x31   :  { %164 = vmatpush.bf16.msra.mxu0 %v518_v8 }
  0x32   :  { %272 = vmatpush.bf16.msra.mxu1 %v527_v18 }
  0x33   :  { %383 = vmatpush.bf16.msra.mxu2 %v537_v41 }
  0x34   :  { %165 = vmatmul.bf16.vlgmr.msra.gmra.mxu0 %v92_v11 }
  0x37   :  { %384 = vmatpush.bf16.msra.mxu2 %v536_v42 }
  0xb1   :  { %v166_v22 = vpop.f32.mrf.mxu0 }
  0xb2   :  { %v171_v23 = vpack.c.bf16 %v166_v22, %v166_v22 }
  0xb4   :  { %v178_v25 = vunpack.c.l.bf16 %v171_v23 }
  0xb6   :  { %v181_v29 = vadd.f32 %v180_v26, %v178_v25 }
  0xb8   :  { %v187_v32 = vmax.f32 %v181_v29, 0.0 }
  0xb9   :  { %v168_v27 = vpop.f32.mrf.mxu0 }
  0xba   :  { %v172_v28 = vpack.c.bf16 %v168_v27, %v168_v27 }
  0xbc   :  { %v179_v30 = vunpack.c.l.bf16 %v172_v28 }
  0xbe   :  { %v182_v31 = vadd.f32 %v180_v26, %v179_v30 }
  0xc0   :  { %v188_v33 = vmax.f32 %v182_v31, 0.0 }
  0xc2   :  { %v547_v34 = vpack.c.bf16 %v188_v33, %v187_v32 }
  0xc4   :  { %548 = vst [vmem:[#allocation2] sm:$0xff] %v547_v34  }
  0xcb   :  { %v526_v35 = vld [vmem:[#allocation2] sm:$0xff] }
  0xcc   :  { %273 = vmatmul.bf16.vlgmr.msra.gmra.mxu1 %v526_v35 }
 0x149   :  { %v274_v45 = vpop.f32.mrf.mxu1 }
 0x14a   :  { %v279_v46 = vpack.c.bf16 %v274_v45, %v274_v45 }
 0x14c   :  { %v286_v48 = vunpack.c.l.bf16 %v279_v46 }
 0x14e   :  { %v289_v52 = vadd.f32 %v288_v49, %v286_v48 }
 0x150   :  { %v295_v55 = vmax.f32 %v289_v52, 0.0 }
 0x151   :  { %v276_v50 = vpop.f32.mrf.mxu1 }
 0x152   :  { %v280_v51 = vpack.c.bf16 %v276_v50, %v276_v50 }
 0x154   :  { %v287_v53 = vunpack.c.l.bf16 %v280_v51 }
 0x156   :  { %v290_v54 = vadd.f32 %v288_v49, %v287_v53 }
 0x158   :  { %v296_v56 = vmax.f32 %v290_v54, 0.0 }
 0x15a   :  { %v552_v57 = vpack.c.bf16 %v296_v56, %v295_v55 }
 0x15c   :  { %553 = vst [vmem:[#allocation3] sm:$0xff] %v552_v57  }
 0x163   :  { %v535_v58 = vld [vmem:[#allocation3] sm:$0xff] }
 0x164   :  { %385 = vmatmul.bf16.vlgmr.msra.gmra.mxu2 %v535_v58 }
 0x1e7   :  { %v386_v60 = vpop.f32.mrf.mxu2 }
 0x1e8   :  { %v387_v61 = vadd.f32 %v563_v59, %v386_v60 }
 0x1ea   :  { %391 = vst [vmem:[#allocation12] sm:$0xff] %v387_v61 }
 0x1ef   :  { %v388_v62 = vpop.f32.mrf.mxu2 }
 0x1f0   :  { %v389_v63 = vadd.f32 %v563_v59, %v388_v62 }
 0x1f2   :  { %392 = vst [vmem:[#allocation12 + $0x8] sm:$0xff] %v389_v63 }
 0x1f3   :  { %405 = dma.vmem_to_hbm [thread:$0]  %s398_s26, 256, %s400_s29, [#allocation6], %s696_s13, %s696_s13, %s697_s14  }
 0x1f4   :  { %690 = dma.done.wait [#allocation6], 256  }
 0x1f5   :  { %691 = vsyncadd [#allocation6], 4294967040 }
 0x1f6   :  { %410 = vsyncpa [#allocation5], 1 }
 0x1f7   :  { %411 = vsyncpa [#allocation8], 1 }
 0x1f8   :  { %412 = vsyncpa [#allocation11], 1 }
 0x1f9   :  { %413 = vsyncpa [#allocation6], 1 }

</bundles_post_ra>
